<compile_context>
chip_gen: v5e
topology: v5e:2x2
jax: 0.10.0
libtpu: 0.0.40
codegen_flags: <defaults>
</compile_context>

<pallas_src>
import functools
import inspect

import numpy as np

import jax
import jax.numpy as jnp
from jax import lax
from jax.experimental import pallas as pl
from jax.experimental.pallas import tpu as pltpu


_NEG = -1.0e30  # "minus infinity" sentinel for the top-k peel (squared mags are >= 0)


def _round_up(a, b):
    return ((a + b - 1) // b) * b


def _supports_single_buffer():
    if not hasattr(pl, "Buffered"):
        return False
    try:
        return "pipeline_mode" in inspect.signature(pl.BlockSpec).parameters
    except (TypeError, ValueError):
        return False


def _dft_bases(length):
    """Merged, lane-padded real-DFT bases.

    CRCI : [L, 2*Fp]  so that  x @ CRCI = [Xr | Xi]   (== torch.fft.rfft re/im)
    IRII : [2*Fp, L]  so that  [Xr | Xi] @ IRII = x'  (== torch.fft.irfft, even L)
    Padded frequency columns/rows are zero, so they contribute nothing.
    """
    n_freq = length // 2 + 1
    f_pad = _round_up(n_freq, 128)
    n = np.arange(length, dtype=np.float64)[:, None]            # [L, 1]
    k = np.arange(n_freq, dtype=np.float64)[None, :]            # [1, F]
    ang = 2.0 * np.pi * n * k / length                          # [L, F]
    w = np.where((k == 0) | (k == length // 2), 1.0, 2.0)       # Hermitian weights
    crci = np.zeros((length, 2 * f_pad), np.float32)
    crci[:, :n_freq] = np.cos(ang)
    crci[:, f_pad:f_pad + n_freq] = -np.sin(ang)
    irii = np.zeros((2 * f_pad, length), np.float32)
    irii[:n_freq, :] = (w / length * np.cos(ang)).T
    irii[f_pad:f_pad + n_freq, :] = (-(w / length) * np.sin(ang)).T
    return jnp.asarray(crci), jnp.asarray(irii), n_freq, f_pad


# ---------------------------------------------------------------------------------
# Pass 1: per-tile min of the per-row (top_k)-th largest squared rfft magnitude.
#   x tile [TR, L] -> kth tile [1, 1, 128] (tile min broadcast across lanes)
# ---------------------------------------------------------------------------------
def _row_kth_kernel(x_ref, crci_ref, kth_ref, *, tile_r, r0, n_rows, f_pad, top_k):
    x = x_ref[...].astype(jnp.float32)                                    # [TR, L]
    xc = jnp.dot(x, crci_ref[...], preferred_element_type=jnp.float32)    # [TR, 2*Fp]
    xr = xc[:, :f_pad]
    xi = xc[:, f_pad:]
    mag2 = xr * xr + xi * xi                                              # [TR, Fp]

    # torch quirk: `freq[0] = 0` zeroes the whole index-0 slice along dim 0,
    # i.e. the first r0 flattened rows.
    row = pl.program_id(0) * tile_r + lax.broadcasted_iota(
        jnp.int32, (tile_r, f_pad), 0)
    mag2 = jnp.where(row < r0, 0.0, mag2)

    # (top_k)-th largest per row, duplicate-safe like torch.topk: peel off the current
    # maximum one occurrence at a time, top_k - 1 times (VPU/XLU only, no sort).
    # Padded lanes hold exactly 0.0 and cannot change the k-th largest (values >= 0).
    colf = lax.broadcasted_iota(jnp.int32, (tile_r, f_pad), 1).astype(jnp.float32)
    m = mag2
    for _ in range(top_k - 1):
        cur = jnp.max(m, axis=-1, keepdims=True)
        pos = jnp.min(jnp.where(m == cur, colf, float(f_pad)),
                      axis=-1, keepdims=True)          # first occurrence of the max
        m = jnp.where(colf == pos, _NEG, m)            # remove exactly one occurrence
    kth = jnp.max(m, axis=-1, keepdims=True)           # [TR, 1]

    # Ragged last tile: rows >= n_rows hold garbage -> exclude them from the tile min.
    kth = jnp.where(row[:, :1] < n_rows, kth, jnp.inf)
    kth_ref[...] = jnp.broadcast_to(jnp.min(kth), kth_ref.shape)


# ---------------------------------------------------------------------------------
# Pass 2: forward DFT -> threshold mask -> inverse DFT -> residual, fused.
#   x tile [TR, L] -> season tile [TR, L], trend tile [TR, L]
# ---------------------------------------------------------------------------------
def _decomp_kernel(thr_ref, x_ref, crci_ref, irii_ref, season_ref, trend_ref,
                   *, tile_r, r0, f_pad):
    x = x_ref[...].astype(jnp.float32)
    xc = jnp.dot(x, crci_ref[...], preferred_element_type=jnp.float32)    # [TR, 2*Fp]
    xr = xc[:, :f_pad]
    xi = xc[:, f_pad:]
    mag2 = xr * xr + xi * xi

    row = pl.program_id(0) * tile_r + lax.broadcasted_iota(
        jnp.int32, (tile_r, f_pad), 0)
    mag2 = jnp.where(row < r0, 0.0, mag2)               # freq[0] = 0 quirk

    keep = mag2 > thr_ref[0]                             # xf[freq <= thr] = 0 (squared)
    xm = jnp.concatenate([jnp.where(keep, xr, 0.0),
                          jnp.where(keep, xi, 0.0)], axis=-1)
    season = jnp.dot(xm, irii_ref[...], preferred_element_type=jnp.float32)
    season_ref[...] = season.astype(season_ref.dtype)
    trend_ref[...] = (x - season).astype(trend_ref.dtype)


# ---------------------------------------------------------------------------------
# Wrapper
# ---------------------------------------------------------------------------------
def _select_tile(n_rows, length, f_pad, itemsize, tile_r, vmem_limit_bytes, basis_bufs):
    basis_bytes = basis_bufs * 2 * (length * 2 * f_pad) * 4      # CRCI + IRII (f32)
    per_row = (2 * length * itemsize                              # x tile, 2x-buffered
               + 4 * length * itemsize                            # season+trend, 2x-buf
               + 10 * max(length, 2 * f_pad) * 4)                 # in-kernel f32 temps
    budget = int(0.7 * vmem_limit_bytes) - basis_bytes
    cap = max(8, (budget // max(per_row, 1)) // 8 * 8) if budget > 0 else 8
    tile = max(8, min(_round_up(int(tile_r), 8), cap, _round_up(n_rows, 8)))
    # v7x megacore: keep >= 2 grid steps so both TensorCores get work.
    if n_rows > 8 and pl.cdiv(n_rows, tile) < 2:
        tile = max(8, _round_up(pl.cdiv(n_rows, 2), 8))
    return tile


def dft_series_decomp(x, top_k=5, tile_r=512, vmem_limit_bytes=64 * 1024 * 1024,
                      return_debug=False):
    if x.ndim < 2:
        # TODO(synk): 1-D inputs (where `freq[0]=0` zeroes only the DC bin) are not
        # supported; TimeMixer always calls this with 3-D [B, T, C] tensors.
        raise NotImplementedError("dft_series_decomp expects a >=2-D input")
    length = x.shape[-1]
    if length % 2 != 0:
        raise ValueError("last-dim length must be even (torch irfft default n)")

    n_rows = int(np.prod(x.shape[:-1]))
    r0 = n_rows // x.shape[0]          # flattened rows hit by the `freq[0] = 0` quirk

    crci, irii, n_freq, f_pad = _dft_bases(length)
    if n_freq < top_k:
        raise ValueError("need at least top_k rfft bins")

    # Grid-invariant bases: single-buffer them only when they are big enough that the
    # second pipeline buffer would waste meaningful VMEM (long-L case).
    single_buf = (_supports_single_buffer()
                  and int(crci.nbytes) + int(irii.nbytes) > 4 * 1024 * 1024)
    basis_bufs = 1 if single_buf else 2

    x2 = x.reshape(n_rows, length)     # native dtype: no astype / pad copies in HBM
    itemsize = jnp.dtype(x.dtype).itemsize
    tile = _select_tile(n_rows, length, f_pad, itemsize, tile_r,
                        vmem_limit_bytes, basis_bufs)
    n_tiles = pl.cdiv(n_rows, tile)

    def basis_spec(shape):
        if single_buf:
            return pl.BlockSpec(shape, lambda i: (0, 0), pipeline_mode=pl.Buffered(1))
        return pl.BlockSpec(shape, lambda i: (0, 0))

    cparams = pltpu.CompilerParams(
        dimension_semantics=("parallel",),
        vmem_limit_bytes=vmem_limit_bytes,
    )

    # ---- pass 1: per-tile min of the per-row top_k-th largest squared magnitude ----
    kth_tiles = pl.pallas_call(
        functools.partial(_row_kth_kernel, tile_r=tile, r0=r0, n_rows=n_rows,
                          f_pad=f_pad, top_k=top_k),
        out_shape=jax.ShapeDtypeStruct((n_tiles, 1, 128), jnp.float32),
        grid_spec=pl.GridSpec(
            grid=(n_tiles,),
            in_specs=[
                pl.BlockSpec((tile, length), lambda i: (i, 0)),
                basis_spec((length, 2 * f_pad)),
            ],
            out_specs=pl.BlockSpec((1, 1, 128), lambda i: (i, 0, 0)),
        ),
        compiler_params=cparams,
    )(x2, crci)

    # Global threshold = top_k_freq.min()  (single scalar, as in the torch code),
    # carried as a squared magnitude (monotone, identical mask).
    thr2 = jnp.min(kth_tiles[:, 0, 0]).reshape(1).astype(jnp.float32)

    # ---- pass 2: mask + inverse DFT + residual, fused --------------------------------
    season2, trend2 = pl.pallas_call(
        functools.partial(_decomp_kernel, tile_r=tile, r0=r0, f_pad=f_pad),
        out_shape=(jax.ShapeDtypeStruct((n_rows, length), x.dtype),
                   jax.ShapeDtypeStruct((n_rows, length), x.dtype)),
        grid_spec=pl.GridSpec(
            grid=(n_tiles,),
            in_specs=[
                pl.BlockSpec(memory_space=pltpu.MemorySpace.SMEM),   # threshold scalar
                pl.BlockSpec((tile, length), lambda i: (i, 0)),
                basis_spec((length, 2 * f_pad)),
                basis_spec((2 * f_pad, length)),
            ],
            out_specs=(pl.BlockSpec((tile, length), lambda i: (i, 0)),
                       pl.BlockSpec((tile, length), lambda i: (i, 0))),
        ),
        compiler_params=cparams,
    )(thr2, x2, crci, irii)

    season = season2.reshape(x.shape)
    trend = trend2.reshape(x.shape)
    if return_debug:
        return season, trend, {"tile": tile, "tile_kth2": kth_tiles[:, 0, 0],
                               "thr2": thr2[0]}
    return season, trend


if __name__ == "__main__":
    key = jax.random.PRNGKey(0)
    # x: [batch, time, channels]; torch.fft.rfft runs along the last axis.
    B, T, C = 2, 12, 16
    top_k = 5
    x = jax.random.normal(key, (B, T, C), dtype=jnp.float32)

    # tile_r=16 so the small demo exercises a multi-tile grid and a ragged last tile.
    fn = jax.jit(functools.partial(dft_series_decomp, top_k=top_k, tile_r=16,
                                   return_debug=True))
    season, trend, dbg = fn(x)
    season = jax.block_until_ready(season)
    trend = jax.block_until_ready(trend)
    tile_kth2 = jax.block_until_ready(dbg["tile_kth2"])
    tile = int(dbg["tile"])

    # ---- reference: literal translation of the torch forward -------------------------
    n_rows = B * T
    xf = jnp.fft.rfft(x)
    freq = jnp.abs(xf)
    freq = freq.at[0].set(0.0)                                   # freq[0] = 0
    thr_ref = jnp.min(-jnp.sort(-freq, axis=-1)[..., top_k - 1])  # top_k_freq.min()
    xf_m = jnp.where(freq <= thr_ref, jnp.zeros_like(xf), xf)
    season_ref = jnp.fft.irfft(xf_m, n=C)
    trend_ref = x - season_ref

    # per-tile reference of the in-kernel top-k + min reduction (squared magnitudes)
    row_kth2 = (-jnp.sort(-(freq.reshape(n_rows, -1) ** 2), axis=-1))[:, top_k - 1]
    n_tiles = tile_kth2.shape[0]
    tile_kth2_ref = jnp.stack(
        [jnp.min(row_kth2[i * tile:min((i + 1) * tile, n_rows)])
         for i in range(n_tiles)])

    assert season.shape == x.shape and trend.shape == x.shape
    err_s = float(jnp.max(jnp.abs(season - season_ref)))
    err_t = float(jnp.max(jnp.abs(trend - trend_ref)))
    err_k = float(jnp.max(jnp.abs(tile_kth2 - tile_kth2_ref)))
    scale_k = 1.0 + float(jnp.max(jnp.abs(tile_kth2_ref)))
    assert err_s < 1e-4, f"season mismatch: {err_s}"
    assert err_t < 1e-4, f"trend mismatch: {err_t}"
    assert err_k < 1e-3 * scale_k, f"tile kth mismatch: {err_k}"

    print("KERNEL_OK")
</pallas_src>

<mosaic_0001>
module attributes {stable_mosaic.version = 11 : i64} {
  func.func @_row_kth_kernel(%arg0: i32, %arg1: memref<16x16xf32, #tpu.memory_space<vmem>>, %arg2: memref<16x256xf32, #tpu.memory_space<vmem>>, %arg3: memref<1x1x128xf32, #tpu.memory_space<vmem>>) attributes {dimension_semantics = [#tpu.dimension_semantics<parallel>], iteration_bounds = array<i64: 2>, scalar_prefetch = 0 : i64, scratch_operands = 0 : i64, tpu.core_type = #tpu.core_type<tc>, window_params = [{transform_indices = @transform_0, window_bounds = array<i64: 16, 16>}, {pipeline_mode = #tpu.pipeline_mode<synchronous>, transform_indices = @transform_1, window_bounds = array<i64: 16, 256>}, {transform_indices = @transform_2, window_bounds = array<i64: 1, 1, 128>}]} {
    %c0 = arith.constant 0 : index
    %c0_0 = arith.constant 0 : index
    %0 = vector.load %arg1[%c0, %c0_0] : memref<16x16xf32, #tpu.memory_space<vmem>>, vector<16x16xf32>
    %c0_1 = arith.constant 0 : index
    %c0_2 = arith.constant 0 : index
    %1 = vector.load %arg2[%c0_1, %c0_2] : memref<16x256xf32, #tpu.memory_space<vmem>>, vector<16x256xf32>
    %cst = arith.constant dense<0.000000e+00> : vector<16x256xf32>
    %2 = tpu.matmul %0, %1, %cst {dimension_numbers = #tpu.dot_dimension_numbers<[1], [0], [0], [1], [0, 0, 1, 1], [], []>} : vector<16x16xf32>, vector<16x256xf32>, vector<16x256xf32> -> vector<16x256xf32>
    %3 = vector.extract_strided_slice %2 {offsets = [0, 0], sizes = [16, 128], strides = [1, 1]} : vector<16x256xf32> to vector<16x128xf32>
    %4 = vector.extract_strided_slice %2 {offsets = [0, 128], sizes = [16, 128], strides = [1, 1]} : vector<16x256xf32> to vector<16x128xf32>
    %5 = arith.mulf %3, %3 : vector<16x128xf32>
    %6 = arith.mulf %4, %4 : vector<16x128xf32>
    %7 = arith.addf %5, %6 : vector<16x128xf32>
    %c16_i32 = arith.constant 16 : i32
    %8 = arith.muli %arg0, %c16_i32 : i32
    %9 = tpu.iota {dimensions = array<i32: 0>} : vector<16x128xi32>
    %10 = vector.broadcast %8 : i32 to vector<16x128xi32>
    %11 = arith.addi %10, %9 : vector<16x128xi32>
    %c12_i32 = arith.constant 12 : i32
    %12 = vector.broadcast %c12_i32 : i32 to vector<16x128xi32>
    %13 = arith.cmpi slt, %11, %12 : vector<16x128xi32>
    %cst_3 = arith.constant 0.000000e+00 : f32
    %14 = vector.broadcast %cst_3 : f32 to vector<16x128xf32>
    %15 = arith.select %13, %14, %7 : vector<16x128xi1>, vector<16x128xf32>
    %16 = tpu.iota {dimensions = array<i32: 1>} : vector<16x128xi32>
    %17 = arith.sitofp %16 : vector<16x128xi32> to vector<16x128xf32>
    %cst_4 = arith.constant dense<0xFF800000> : vector<16xf32>
    %18 = vector.multi_reduction <maximumf>, %15, %cst_4 [1] : vector<16x128xf32> to vector<16xf32>
    %19 = vector.shape_cast %18 : vector<16xf32> to vector<16x1xf32>
    %20 = vector.broadcast %19 : vector<16x1xf32> to vector<16x128xf32>
    %21 = arith.cmpf oeq, %15, %20 : vector<16x128xf32>
    %cst_5 = arith.constant 1.280000e+02 : f32
    %22 = vector.broadcast %cst_5 : f32 to vector<16x128xf32>
    %23 = arith.select %21, %17, %22 : vector<16x128xi1>, vector<16x128xf32>
    %cst_6 = arith.constant dense<0x7F800000> : vector<16xf32>
    %24 = vector.multi_reduction <minimumf>, %23, %cst_6 [1] : vector<16x128xf32> to vector<16xf32>
    %25 = vector.shape_cast %24 : vector<16xf32> to vector<16x1xf32>
    %26 = vector.broadcast %25 : vector<16x1xf32> to vector<16x128xf32>
    %27 = arith.cmpf oeq, %17, %26 : vector<16x128xf32>
    %cst_7 = arith.constant -1.000000e+30 : f32
    %28 = vector.broadcast %cst_7 : f32 to vector<16x128xf32>
    %29 = arith.select %27, %28, %15 : vector<16x128xi1>, vector<16x128xf32>
    %cst_8 = arith.constant dense<0xFF800000> : vector<16xf32>
    %30 = vector.multi_reduction <maximumf>, %29, %cst_8 [1] : vector<16x128xf32> to vector<16xf32>
    %31 = vector.shape_cast %30 : vector<16xf32> to vector<16x1xf32>
    %32 = vector.broadcast %31 : vector<16x1xf32> to vector<16x128xf32>
    %33 = arith.cmpf oeq, %29, %32 : vector<16x128xf32>
    %cst_9 = arith.constant 1.280000e+02 : f32
    %34 = vector.broadcast %cst_9 : f32 to vector<16x128xf32>
    %35 = arith.select %33, %17, %34 : vector<16x128xi1>, vector<16x128xf32>
    %cst_10 = arith.constant dense<0x7F800000> : vector<16xf32>
    %36 = vector.multi_reduction <minimumf>, %35, %cst_10 [1] : vector<16x128xf32> to vector<16xf32>
    %37 = vector.shape_cast %36 : vector<16xf32> to vector<16x1xf32>
    %38 = vector.broadcast %37 : vector<16x1xf32> to vector<16x128xf32>
    %39 = arith.cmpf oeq, %17, %38 : vector<16x128xf32>
    %cst_11 = arith.constant -1.000000e+30 : f32
    %40 = vector.broadcast %cst_11 : f32 to vector<16x128xf32>
    %41 = arith.select %39, %40, %29 : vector<16x128xi1>, vector<16x128xf32>
    %cst_12 = arith.constant dense<0xFF800000> : vector<16xf32>
    %42 = vector.multi_reduction <maximumf>, %41, %cst_12 [1] : vector<16x128xf32> to vector<16xf32>
    %43 = vector.shape_cast %42 : vector<16xf32> to vector<16x1xf32>
    %44 = vector.broadcast %43 : vector<16x1xf32> to vector<16x128xf32>
    %45 = arith.cmpf oeq, %41, %44 : vector<16x128xf32>
    %cst_13 = arith.constant 1.280000e+02 : f32
    %46 = vector.broadcast %cst_13 : f32 to vector<16x128xf32>
    %47 = arith.select %45, %17, %46 : vector<16x128xi1>, vector<16x128xf32>
    %cst_14 = arith.constant dense<0x7F800000> : vector<16xf32>
    %48 = vector.multi_reduction <minimumf>, %47, %cst_14 [1] : vector<16x128xf32> to vector<16xf32>
    %49 = vector.shape_cast %48 : vector<16xf32> to vector<16x1xf32>
    %50 = vector.broadcast %49 : vector<16x1xf32> to vector<16x128xf32>
    %51 = arith.cmpf oeq, %17, %50 : vector<16x128xf32>
    %cst_15 = arith.constant -1.000000e+30 : f32
    %52 = vector.broadcast %cst_15 : f32 to vector<16x128xf32>
    %53 = arith.select %51, %52, %41 : vector<16x128xi1>, vector<16x128xf32>
    %cst_16 = arith.constant dense<0xFF800000> : vector<16xf32>
    %54 = vector.multi_reduction <maximumf>, %53, %cst_16 [1] : vector<16x128xf32> to vector<16xf32>
    %55 = vector.shape_cast %54 : vector<16xf32> to vector<16x1xf32>
    %56 = vector.broadcast %55 : vector<16x1xf32> to vector<16x128xf32>
    %57 = arith.cmpf oeq, %53, %56 : vector<16x128xf32>
    %cst_17 = arith.constant 1.280000e+02 : f32
    %58 = vector.broadcast %cst_17 : f32 to vector<16x128xf32>
    %59 = arith.select %57, %17, %58 : vector<16x128xi1>, vector<16x128xf32>
    %cst_18 = arith.constant dense<0x7F800000> : vector<16xf32>
    %60 = vector.multi_reduction <minimumf>, %59, %cst_18 [1] : vector<16x128xf32> to vector<16xf32>
    %61 = vector.shape_cast %60 : vector<16xf32> to vector<16x1xf32>
    %62 = vector.broadcast %61 : vector<16x1xf32> to vector<16x128xf32>
    %63 = arith.cmpf oeq, %17, %62 : vector<16x128xf32>
    %cst_19 = arith.constant -1.000000e+30 : f32
    %64 = vector.broadcast %cst_19 : f32 to vector<16x128xf32>
    %65 = arith.select %63, %64, %53 : vector<16x128xi1>, vector<16x128xf32>
    %cst_20 = arith.constant dense<0xFF800000> : vector<16xf32>
    %66 = vector.multi_reduction <maximumf>, %65, %cst_20 [1] : vector<16x128xf32> to vector<16xf32>
    %67 = vector.shape_cast %66 : vector<16xf32> to vector<16x1xf32>
    %68 = vector.extract_strided_slice %11 {offsets = [0, 0], sizes = [16, 1], strides = [1, 1]} : vector<16x128xi32> to vector<16x1xi32>
    %c24_i32 = arith.constant 24 : i32
    %69 = vector.broadcast %c24_i32 : i32 to vector<16x1xi32>
    %70 = arith.cmpi slt, %68, %69 : vector<16x1xi32>
    %cst_21 = arith.constant 0x7F800000 : f32
    %71 = vector.broadcast %cst_21 : f32 to vector<16x1xf32>
    %72 = arith.select %70, %67, %71 : vector<16x1xi1>, vector<16x1xf32>
    %73 = vector.shape_cast %72 : vector<16x1xf32> to vector<1x16x1xf32>
    %cst_22 = arith.constant dense<0x7F800000> : vector<1xf32>
    %74 = vector.multi_reduction <minimumf>, %73, %cst_22 [1, 2] : vector<1x16x1xf32> to vector<1xf32>
    %75 = vector.shape_cast %74 : vector<1xf32> to vector<1x1x1xf32>
    %76 = vector.extract %75[0, 0, 0] : f32 from vector<1x1x1xf32>
    %77 = vector.broadcast %76 : f32 to vector<1x1x128xf32>
    %c0_23 = arith.constant 0 : index
    %c0_24 = arith.constant 0 : index
    %c0_25 = arith.constant 0 : index
    %78 = vector.load %arg3[%c0_23, %c0_24, %c0_25] : memref<1x1x128xf32, #tpu.memory_space<vmem>>, vector<1x1x128xf32>
    tpu.vector_store %arg3[%c0_23, %c0_24, %c0_25], %77 {strides = array<i32>} : memref<1x1x128xf32, #tpu.memory_space<vmem>>, vector<1x1x128xf32>,
    return
  }
  func.func @transform_0(%arg0: i32) -> (i32, i32) {
    %c0_i32 = arith.constant 0 : i32
    %c0_i32_0 = arith.constant 0 : i32
    return %arg0, %c0_i32 : i32, i32
  }
  func.func @transform_1(%arg0: i32) -> (i32, i32) {
    %c0_i32 = arith.constant 0 : i32
    %c0_i32_0 = arith.constant 0 : i32
    %c0_i32_1 = arith.constant 0 : i32
    return %c0_i32, %c0_i32_0 : i32, i32
  }
  func.func @transform_2(%arg0: i32) -> (i32, i32, i32) {
    %c0_i32 = arith.constant 0 : i32
    %c0_i32_0 = arith.constant 0 : i32
    %c0_i32_1 = arith.constant 0 : i32
    return %arg0, %c0_i32, %c0_i32_0 : i32, i32, i32
  }
}

module attributes {stable_mosaic.version = 11 : i64} {
  func.func @_decomp_kernel(%arg0: i32, %arg1: memref<1xf32, #tpu.memory_space<smem>>, %arg2: memref<16x16xf32, #tpu.memory_space<vmem>>, %arg3: memref<16x256xf32, #tpu.memory_space<vmem>>, %arg4: memref<256x16xf32, #tpu.memory_space<vmem>>, %arg5: memref<16x16xf32, #tpu.memory_space<vmem>>, %arg6: memref<16x16xf32, #tpu.memory_space<vmem>>) attributes {dimension_semantics = [#tpu.dimension_semantics<parallel>], iteration_bounds = array<i64: 2>, scalar_prefetch = 0 : i64, scratch_operands = 0 : i64, tpu.core_type = #tpu.core_type<tc>, window_params = [{transform_indices = @transform_0, window_bounds = array<i64: 1>}, {transform_indices = @transform_1, window_bounds = array<i64: 16, 16>}, {pipeline_mode = #tpu.pipeline_mode<synchronous>, transform_indices = @transform_2, window_bounds = array<i64: 16, 256>}, {pipeline_mode = #tpu.pipeline_mode<synchronous>, transform_indices = @transform_3, window_bounds = array<i64: 256, 16>}, {transform_indices = @transform_4, window_bounds = array<i64: 16, 16>}, {transform_indices = @transform_5, window_bounds = array<i64: 16, 16>}]} {
    %c0 = arith.constant 0 : index
    %c0_0 = arith.constant 0 : index
    %0 = vector.load %arg2[%c0, %c0_0] : memref<16x16xf32, #tpu.memory_space<vmem>>, vector<16x16xf32>
    %c0_1 = arith.constant 0 : index
    %c0_2 = arith.constant 0 : index
    %1 = vector.load %arg3[%c0_1, %c0_2] : memref<16x256xf32, #tpu.memory_space<vmem>>, vector<16x256xf32>
    %cst = arith.constant dense<0.000000e+00> : vector<16x256xf32>
    %2 = tpu.matmul %0, %1, %cst {dimension_numbers = #tpu.dot_dimension_numbers<[1], [0], [0], [1], [0, 0, 1, 1], [], []>} : vector<16x16xf32>, vector<16x256xf32>, vector<16x256xf32> -> vector<16x256xf32>
    %3 = vector.extract_strided_slice %2 {offsets = [0, 0], sizes = [16, 128], strides = [1, 1]} : vector<16x256xf32> to vector<16x128xf32>
    %4 = vector.extract_strided_slice %2 {offsets = [0, 128], sizes = [16, 128], strides = [1, 1]} : vector<16x256xf32> to vector<16x128xf32>
    %5 = arith.mulf %3, %3 : vector<16x128xf32>
    %6 = arith.mulf %4, %4 : vector<16x128xf32>
    %7 = arith.addf %5, %6 : vector<16x128xf32>
    %c16_i32 = arith.constant 16 : i32
    %8 = arith.muli %arg0, %c16_i32 : i32
    %9 = tpu.iota {dimensions = array<i32: 0>} : vector<16x128xi32>
    %10 = vector.broadcast %8 : i32 to vector<16x128xi32>
    %11 = arith.addi %10, %9 : vector<16x128xi32>
    %c12_i32 = arith.constant 12 : i32
    %12 = vector.broadcast %c12_i32 : i32 to vector<16x128xi32>
    %13 = arith.cmpi slt, %11, %12 : vector<16x128xi32>
    %cst_3 = arith.constant 0.000000e+00 : f32
    %14 = vector.broadcast %cst_3 : f32 to vector<16x128xf32>
    %15 = arith.select %13, %14, %7 : vector<16x128xi1>, vector<16x128xf32>
    %c0_4 = arith.constant 0 : index
    %16 = memref.load %arg1[%c0_4] : memref<1xf32, #tpu.memory_space<smem>>
    %17 = vector.broadcast %16 : f32 to vector<16x128xf32>
    %18 = arith.cmpf ogt, %15, %17 : vector<16x128xf32>
    %cst_5 = arith.constant 0.000000e+00 : f32
    %19 = vector.broadcast %cst_5 : f32 to vector<16x128xf32>
    %20 = arith.select %18, %3, %19 : vector<16x128xi1>, vector<16x128xf32>
    %cst_6 = arith.constant 0.000000e+00 : f32
    %21 = vector.broadcast %cst_6 : f32 to vector<16x128xf32>
    %22 = arith.select %18, %4, %21 : vector<16x128xi1>, vector<16x128xf32>
    %23 = tpu.concatenate %20, %22 in 1 : vector<16x128xf32>, vector<16x128xf32> -> vector<16x256xf32>
    %c0_7 = arith.constant 0 : index
    %c0_8 = arith.constant 0 : index
    %24 = vector.load %arg4[%c0_7, %c0_8] : memref<256x16xf32, #tpu.memory_space<vmem>>, vector<256x16xf32>
    %cst_9 = arith.constant dense<0.000000e+00> : vector<16x16xf32>
    %25 = tpu.matmul %23, %24, %cst_9 {dimension_numbers = #tpu.dot_dimension_numbers<[1], [0], [0], [1], [0, 0, 1, 1], [], []>} : vector<16x256xf32>, vector<256x16xf32>, vector<16x16xf32> -> vector<16x16xf32>
    %c0_10 = arith.constant 0 : index
    %c0_11 = arith.constant 0 : index
    %26 = vector.load %arg5[%c0_10, %c0_11] : memref<16x16xf32, #tpu.memory_space<vmem>>, vector<16x16xf32>
    tpu.vector_store %arg5[%c0_10, %c0_11], %25 {strides = array<i32>} : memref<16x16xf32, #tpu.memory_space<vmem>>, vector<16x16xf32>,
    %27 = arith.subf %0, %25 : vector<16x16xf32>
    %c0_12 = arith.constant 0 : index
    %c0_13 = arith.constant 0 : index
    %28 = vector.load %arg6[%c0_12, %c0_13] : memref<16x16xf32, #tpu.memory_space<vmem>>, vector<16x16xf32>
    tpu.vector_store %arg6[%c0_12, %c0_13], %27 {strides = array<i32>} : memref<16x16xf32, #tpu.memory_space<vmem>>, vector<16x16xf32>,
    return
  }
  func.func @transform_0(%arg0: i32) -> i32 {
    %c0_i32 = arith.constant 0 : i32
    %c0_i32_0 = arith.constant 0 : i32
    return %c0_i32 : i32
  }
  func.func @transform_1(%arg0: i32) -> (i32, i32) {
    %c0_i32 = arith.constant 0 : i32
    %c0_i32_0 = arith.constant 0 : i32
    return %arg0, %c0_i32 : i32, i32
  }
  func.func @transform_2(%arg0: i32) -> (i32, i32) {
    %c0_i32 = arith.constant 0 : i32
    %c0_i32_0 = arith.constant 0 : i32
    %c0_i32_1 = arith.constant 0 : i32
    return %c0_i32, %c0_i32_0 : i32, i32
  }
  func.func @transform_3(%arg0: i32) -> (i32, i32) {
    %c0_i32 = arith.constant 0 : i32
    %c0_i32_0 = arith.constant 0 : i32
    %c0_i32_1 = arith.constant 0 : i32
    return %c0_i32, %c0_i32_0 : i32, i32
  }
  func.func @transform_4(%arg0: i32) -> (i32, i32) {
    %c0_i32 = arith.constant 0 : i32
    %c0_i32_0 = arith.constant 0 : i32
    return %arg0, %c0_i32 : i32, i32
  }
  func.func @transform_5(%arg0: i32) -> (i32, i32) {
    %c0_i32 = arith.constant 0 : i32
    %c0_i32_0 = arith.constant 0 : i32
    return %arg0, %c0_i32 : i32, i32
  }
}

</mosaic_0001>

<bundles_post_ra>
// kernel: dft_series_decomp.3
= control target key start
LH: loop header
LB: loop body
LE: loop exit
PB: predicated region body
PF: predicated region fallthrough
CT: control target
= control target key end

     0   :  { %s1511_s0 = inlined_call_operand.<no memory space> [shape: f32[1], index: 0, kind: input, shape index: {}]   ;;  %s1512_s1 = inlined_call_operand.vmem [shape: f32[24,16], index: 1, kind: input, shape index: {}]   ;;  %s1513_s2 = inlined_call_operand.vmem [shape: f32[16,256], index: 2, kind: input, shape index: {}]   ;;  %s1514_s3 = inlined_call_operand.hbm [shape: f32[256,16], index: 3, kind: input, shape index: {}]   ;;  %s1515_s4 = inlined_call_operand.vmem [shape: f32[24,16], index: 4, kind: output, shape index: {0}]   ;;  %s1516_s5 = inlined_call_operand.vmem [shape: f32[24,16], index: 5, kind: output, shape index: {1}]  }
   0x1   :  { %11 = sst [smem:[#allocation2]] %s1511_s0 }
   0x2   :  { %12 = vsyncpa [#allocation4], 0  ;;  %s1349_s20 = smov 0   ;;  %s1351_s21 = smov 0  }
   0x3   :  { %s1353_s22 = smov 0  }
   0x4 LB: > { %s1362_s0 = sadd.s32 4294967295, %s1247_s22   ;;  %s1364_s23 = sadd.s32 1, %s1247_s22   ;;  %s1247_s22 = sphi %s1353_s22, %s1520_s22   ;;  %s1243_s21 = sphi %s1351_s21, %s1519_s21   ;;  %s1239_s20 = sphi %s1349_s20, %s1518_s20  }
   0x5   : > { %s111_s24 = ssub.s32 %s1247_s22, %s1364_s23  ;;  %s114_s25 = sadd.s32 1, %s1243_s21 }
   0x6   : > { %p112_p0 = scmp.eq.s32.totalorder %s111_s24, 0  ;;  %p124_p1 = scmp.ne.s32.totalorder %s1243_s21, %s1239_s20 }
   0x7   : > { %p125_p2 = scmp.eq.s32.totalorder %s1362_s0, 1  ;;  %p874_p3 = scmp.ge.s32.totalorder %s1247_s22, 1 }
   0x8   : > { %s1372_s26 = scalar_select %p112_p0, %s1243_s21, %s114_s25  }
   0x9   : > { %p1374_p4 = por %p125_p2, %p124_p1  ;;  %p164_p5 = scmp.lt.s32.totalorder %s1247_s22, 3 }
   0xa   : > { %p970_p6 = scmp.eq.s32.totalorder %s1362_s0, 0  ;;  %s181_s30 = sshll.u32 %s1514_s3, 4  ;;  %s182_s30 = int_to_ptr.hbm [resolvable:$true] %s181_s30 }
   0xb   : > { %p165_p7 = pnand %p874_p3, %p164_p5  ;;  %s1313_s6 = smov [#allocation3]  }
   0xc   : > { %s183_s7 = sshll.u32 %s1313_s6, 4  ;;  %s1314_s8 = smov 128   ;;  %s184_s7 = int_to_ptr.vmem [resolvable:$true] %s183_s7 }
   0xd   : > { %p966_p8 = pneg %p165_p7  ;;  %s1315_s9 = smov 8  }
   0xe   : > { %216 = sbr.rel (%p165_p7) target bundleno = 388 (0x184), region = 36 }
   0xf   : > { %p967_p9 = pnand %p970_p6, %p966_p8 }
  0x11   : > { %969 = dma.hbm_to_vmem [thread:$0]  (!%p967_p9), %s182_s30, 4096, %s184_s7, [#allocation4], %s1314_s8, %s1314_s8, %s1315_s9  }
  0x13   : > { %1234 = dma.done.wait (%p970_p6), [#allocation4], 4096  }
  0x14   : > { %1236 = vsyncadd (%p970_p6), [#allocation4], 4294963200  ;;  %s1389_s10 = sshll.u32 %s1362_s0, 1  ;;  %v280_v0 = vld [vmem:[%s1513_s2 + $0x10] sm:$0xff]  ;;  %v281_v1 = vld [vmem:[%s1513_s2 + $0x18] sm:$0xff]  ;;  %vm282_vm0 = vcmask 130048   ;;  %v342_v38 = vlaneseq }
  0x15   : > { %p257_p10 = scmp.lt.s32.totalorder %s1389_s10, 2  ;;  %v278_v2 = vld [vmem:[%s1513_s2] sm:$0xff]  ;;  %303 = vmatpush.msra.mxu0 %v280_v0  ;;  %326 = vmatpush.msra.mxu1 %v281_v1  ;;  %v279_v3 = vld [vmem:[%s1513_s2 + $0x8] sm:$0xff]  ;;  %v375_v5 = vld [vmem:[#allocation3 + $0x78] sm:$0xff]  ;;  %s1421_s29 = sshll.u32 %s1362_s0, 4 }
  0x16   : > { %v391_v6 = vld [vmem:[#allocation3 + $0xf8] sm:$0xff]  ;;  %v374_v7 = vld [vmem:[#allocation3 + $0x70] sm:$0xff]  ;;  %v373_v9 = vld [vmem:[#allocation3 + $0x68] sm:$0xff]  ;;  %930 = vmatpush.msra.mxu2 %v375_v5  ;;  %v343_v39 = vshrl.u32 %v342_v38, 7  ;;  %v345_v40 = vstv %s1421_s29  ;;  %s352_s30 = sld [smem:[#allocation2]]  ;;  %s243_s0 = sand.u32 1, %s1239_s20  }
  0x17   : > { %s258_s11 = scalar_select %p257_p10, %s1389_s10, 2  ;;  %304 = vmatpush.msra.mxu0 %v278_v2  ;;  %327 = vmatpush.msra.mxu1 %v279_v3  ;;  %v390_v8 = vld [vmem:[#allocation3 + $0xf0] sm:$0xff]  ;;  %v389_v10 = vld [vmem:[#allocation3 + $0xe8] sm:$0xff]  ;;  %v372_v11 = vld [vmem:[#allocation3 + $0x60] sm:$0xff] }
  0x18   : > { %946 = vmatpush.msra.mxu3 %v391_v6  ;;  %v388_v12 = vld [vmem:[#allocation3 + $0xe0] sm:$0xff]  ;;  %931 = vmatpush.msra.mxu2 %v374_v7  ;;  %v371_v14 = vld [vmem:[#allocation3 + $0x58] sm:$0xff]  ;;  %v370_v16 = vld [vmem:[#allocation3 + $0x50] sm:$0xff]  ;;  %v346_v41 = vadd.s32 %v345_v40, %v343_v39  ;;  %v344_v46 = vadd.s32 8, %v343_v39  ;;  %s879_s6 = sshll.u32 %s243_s0, 4  ;;  %s456_s20 = ssub.s32 (%p1374_p4), 3, %s1389_s10 }
  0x19   : > { %s882_s12 = sshll.u32 %s258_s11, 3  ;;  %392 = vmatpush.msrb.mxu0 %v375_v5  ;;  %415 = vmatpush.msrb.mxu1 %v391_v6  ;;  %v387_v15 = vld [vmem:[#allocation3 + $0xd8] sm:$0xff]  ;;  %v386_v17 = vld [vmem:[#allocation3 + $0xd0] sm:$0xff]  ;;  %v369_v18 = vld [vmem:[#allocation3 + $0x48] sm:$0xff]  ;;  %s1425_s7 = scalar_lea.vmem [#allocation5], %s879_s6  }
  0x1a   : > { %s260_s15 = scalar_lea.vmem %s1512_s1, %s882_s12  ;;  %947 = vmatpush.msra.mxu3 %v390_v8  ;;  %932 = vmatpush.msra.mxu2 %v373_v9  ;;  %v385_v19 = vld [vmem:[#allocation3 + $0xc8] sm:$0xff]  ;;  %v368_v20 = vld [vmem:[#allocation3 + $0x40] sm:$0xff]  ;;  %v367_v22 = vld [vmem:[#allocation3 + $0x38] sm:$0xff]  ;;  %vm348_vm1 = vcmp.lt.s32.totalorder %v346_v41, 12  ;;  %v347_v50 = vadd.s32 %v345_v40, %v344_v46  ;;  %s1430_s8 = scalar_lea.vmem [#allocation6], %s879_s6  }
  0x1b   : > { %v1408_v4 = vld [vmem:[%s260_s15] sm:$0xff]  ;;  %393 = vmatpush.msrb.mxu0 %v374_v7  ;;  %416 = vmatpush.msrb.mxu1 %v390_v8  ;;  %v1414_v13 = vld [vmem:[%s260_s15 + $0x8] sm:$0xff]  ;;  %v383_v23 = vld [vmem:[#allocation3 + $0xb8] sm:$0xff]  ;;  %s1446_s12 = scalar_lea.vmem (%p1374_p4), %s1515_s4, %s1421_s29   ;;  %p457_p11 = scmp.lt.s32.totalorder (%p1374_p4), %s456_s20, 2 }
  0x1c   : > { %883 = vmatmul.msk.f32.vlgmr.msra.gmra.mxu0 %vm282_vm0, %v1408_v4  ;;  %885 = vmatmul.msk.f32.vlgmr.msra.gmra.mxu1 %vm282_vm0, %v1408_v4  ;;  %v384_v21 = vld [vmem:[#allocation3 + $0xc0] sm:$0xff]  ;;  %v366_v24 = vld [vmem:[#allocation3 + $0x30] sm:$0xff]  ;;  %v365_v26 = vld [vmem:[#allocation3 + $0x28] sm:$0xff]  ;;  %v353_v48 = vstv %s352_s30  ;;  %vm349_vm3 = vcmp.lt.s32.totalorder %v347_v50, 12 }
  0x1d   : > { %394 = vmatpush.msrb.mxu0 %v373_v9  ;;  %417 = vmatpush.msrb.mxu1 %v389_v10  ;;  %v382_v25 = vld [vmem:[#allocation3 + $0xb0] sm:$0xff]  ;;  %v381_v27 = vld [vmem:[#allocation3 + $0xa8] sm:$0xff]  ;;  %v364_v28 = vld [vmem:[#allocation3 + $0x20] sm:$0xff] }
  0x1e   : > { %948 = vmatpush.msra.mxu3 %v389_v10  ;;  %933 = vmatpush.msra.mxu2 %v372_v11  ;;  %v380_v29 = vld [vmem:[#allocation3 + $0xa0] sm:$0xff]  ;;  %v363_v30 = vld [vmem:[#allocation3 + $0x18] sm:$0xff]  ;;  %v362_v32 = vld [vmem:[#allocation3 + $0x10] sm:$0xff] }
  0x1f   : > { %395 = vmatpush.msrb.mxu0 %v372_v11  ;;  %418 = vmatpush.msrb.mxu1 %v388_v12  ;;  %v379_v31 = vld [vmem:[#allocation3 + $0x98] sm:$0xff]  ;;  %v378_v33 = vld [vmem:[#allocation3 + $0x90] sm:$0xff]  ;;  %v361_v34 = vld [vmem:[#allocation3 + $0x8] sm:$0xff] }
  0x20   : > { %949 = vmatpush.msra.mxu3 %v388_v12  ;;  %934 = vmatpush.msra.mxu2 %v371_v14  ;;  %v377_v35 = vld [vmem:[#allocation3 + $0x88] sm:$0xff]  ;;  %v360_v36 = vld [vmem:[#allocation3] sm:$0xff] }
  0x21   : > { %396 = vmatpush.msrb.mxu0 %v371_v14  ;;  %419 = vmatpush.msrb.mxu1 %v387_v15  ;;  %v376_v37 = vld [vmem:[#allocation3 + $0x80] sm:$0xff] }
  0x22   : > { %950 = vmatpush.msra.mxu3 %v387_v15  ;;  %935 = vmatpush.msra.mxu2 %v370_v16 }
  0x23   : > { %397 = vmatpush.msrb.mxu0 %v370_v16  ;;  %420 = vmatpush.msrb.mxu1 %v386_v17 }
  0x24   : > { %884 = vmatmul.msk.f32.gmra.mxu0 %vm282_vm0, %v1414_v13  ;;  %886 = vmatmul.msk.f32.gmra.mxu1 %vm282_vm0, %v1414_v13 }
  0x25   : > { %398 = vmatpush.msrb.mxu0 %v369_v18  ;;  %421 = vmatpush.msrb.mxu1 %v385_v19 }
  0x26   : > { %951 = vmatpush.msra.mxu3 %v386_v17  ;;  %936 = vmatpush.msra.mxu2 %v369_v18 }
  0x27   : > { %399 = vmatpush.msrb.mxu0 %v368_v20  ;;  %422 = vmatpush.msrb.mxu1 %v384_v21 }
  0x28   : > { %952 = vmatpush.msra.mxu3 %v385_v19  ;;  %937 = vmatpush.msra.mxu2 %v368_v20 }
  0x29   : > { %400 = vmatpush.msrb.mxu0 %v367_v22  ;;  %423 = vmatpush.msrb.mxu1 %v383_v23 }
  0x2a   : > { %953 = vmatpush.msra.mxu3 %v384_v21  ;;  %938 = vmatpush.msra.mxu2 %v367_v22 }
  0x2b   : > { %401 = vmatpush.msrb.mxu0 %v366_v24  ;;  %424 = vmatpush.msrb.mxu1 %v382_v25 }
  0x2c   : > { %954 = vmatpush.msra.mxu3 %v383_v23  ;;  %939 = vmatpush.msra.mxu2 %v366_v24 }
  0x2d   : > { %402 = vmatpush.msrb.mxu0 %v365_v26  ;;  %425 = vmatpush.msrb.mxu1 %v381_v27 }
  0x2e   : > { %955 = vmatpush.msra.mxu3 %v382_v25  ;;  %940 = vmatpush.msra.mxu2 %v365_v26 }
  0x2f   : > { %403 = vmatpush.msrb.mxu0 %v364_v28  ;;  %426 = vmatpush.msrb.mxu1 %v380_v29 }
  0x30   : > { %956 = vmatpush.msra.mxu3 %v381_v27  ;;  %941 = vmatpush.msra.mxu2 %v364_v28 }
  0x31   : > { %404 = vmatpush.msrb.mxu0 %v363_v30  ;;  %427 = vmatpush.msrb.mxu1 %v379_v31 }
  0x32   : > { %957 = vmatpush.msra.mxu3 %v380_v29  ;;  %942 = vmatpush.msra.mxu2 %v363_v30 }
  0x33   : > { %405 = vmatpush.msrb.mxu0 %v362_v32  ;;  %428 = vmatpush.msrb.mxu1 %v378_v33 }
  0x34   : > { %958 = vmatpush.msra.mxu3 %v379_v31  ;;  %943 = vmatpush.msra.mxu2 %v362_v32 }
  0x35   : > { %406 = vmatpush.msrb.mxu0 %v361_v34  ;;  %429 = vmatpush.msrb.mxu1 %v377_v35 }
  0x36   : > { %959 = vmatpush.msra.mxu3 %v378_v33  ;;  %944 = vmatpush.msra.mxu2 %v361_v34 }
  0x37   : > { %407 = vmatpush.msrb.mxu0 %v360_v36  ;;  %430 = vmatpush.msrb.mxu1 %v376_v37 }
  0x38   : > { %960 = vmatpush.msra.mxu3 %v377_v35  ;;  %945 = vmatpush.msra.mxu2 %v360_v36 }
  0x3a   : > { %961 = vmatpush.msra.mxu3 %v376_v37 }
  0x99   : > { %v306_v42 = vpop.f32.mrf.mxu0  ;;  %v329_v43 = vpop.f32.mrf.mxu1 }
  0x9a   : > { %v335_v44 = vmul.f32 %v306_v42, %v306_v42  ;;  %v337_v45 = vmul.f32 %v329_v43, %v329_v43 }
  0x9c   : > { %v339_v47 = vadd.f32 %v337_v45, %v335_v44 }
  0x9e   : > { %v350_v49 = vsel %vm348_vm1, 0.0, %v339_v47 }
  0x9f   : > { %vm354_vm2 = vcmp.gt.f32.partialorder %v350_v49, %v353_v48 }
  0xa0   : > { %888 = vmatmul.msk.f32.vlgmr.msrb.gmra.mxu0 %vm354_vm2, %v306_v42  ;;  %890 = vmatmul.msk.f32.vlgmr.msrb.gmra.mxu1 %vm354_vm2, %v329_v43 }
  0xa1   : > { %v309_v51 = vpop.f32.mrf.mxu0  ;;  %v332_v52 = vpop.f32.mrf.mxu1 }
  0xa2   : > { %v336_v53 = vmul.f32 %v309_v51, %v309_v51  ;;  %v338_v54 = vmul.f32 %v332_v52, %v332_v52 }
  0xa4   : > { %v340_v55 = vadd.f32 %v338_v54, %v336_v53 }
  0xa6   : > { %v351_v56 = vsel %vm349_vm3, 0.0, %v340_v55 }
  0xa7   : > { %vm355_vm4 = vcmp.gt.f32.partialorder %v351_v56, %v353_v48 }
  0xa8   : > { %889 = vmatmul.msk.f32.vlgmr.msra.gmra.mxu2 %vm355_vm4, %v309_v51  ;;  %891 = vmatmul.msk.f32.vlgmr.msra.gmra.mxu3 %vm355_vm4, %v332_v52 }
 0x11d   : > { %v409_v57 = vpop.f32.mrf.mxu0  ;;  %v432_v58 = vpop.f32.mrf.mxu1 }
 0x11e   : > { %v433_v59 = vadd.f32 %v432_v58, %v409_v57 }
 0x120   : > { %438 = vst.msk [vmem:[%s1425_s7] sm:$0xff] %vm282_vm0, %v433_v59  ;;  %v440_v60 = vsub.f32 %v1408_v4, %v433_v59 }
 0x122   : > { %442 = vst.msk [vmem:[%s1430_s8] sm:$0xff] %vm282_vm0, %v440_v60 }
 0x12b   : > { %v412_v61 = vpop.f32.mrf.mxu2  ;;  %v435_v62 = vpop.f32.mrf.mxu3 }
 0x12c   : > { %v436_v63 = vadd.f32 %v435_v62, %v412_v61  ;;  %454 = sbr.rel (!%p1374_p4) target bundleno = 344 (0x158), region = 44 }
 0x12e   : > { %439 = vst.msk [vmem:[%s1425_s7 + $0x8] sm:$0xff] %vm282_vm0, %v436_v63  ;;  %v441_v0 = vsub.f32 %v1414_v13, %v436_v63 }
 0x130   : > { %443 = vst.msk [vmem:[%s1430_s8 + $0x8] sm:$0xff] %vm282_vm0, %v441_v0 }
 0x131   : > { %s1522_s20 = smov (!%p457_p11, %s456_s20), 2 }
 0x132   : > { %s895_s13 = sshll.u32 %s1522_s20, 3 }
 0x133   : > { %p898_p12 = scmp.eq.s32.totalorder %s895_s13, 0 }
 0x134   : > { %s1452_s14 = sshrl.u32 (!%p898_p12), %s1522_s20, 1 }
 0x135   : > { %465 = sbr.rel (%p898_p12) target bundleno = 344 (0x158), region = 48  ;;  %p899_p13 = scmp.le.s32.totalorder (!%p898_p12), %s1452_s14, 0 }
 0x13a   : > { %783 = sbr.rel (%p899_p13) target bundleno = 327 (0x147), region = 197  ;;  %s1249_s15 = smov (!%p899_p13), %s1446_s12  }
 0x13b   : > { %s1253_s16 = smov (!%p899_p13), %s1425_s7   ;;  %s1257_s17 = smov (!%p899_p13), 0  }
 0x13c   : > { %s1261_s18 = smov (!%p899_p13), 0  }
 0x13f LB: >> { %v530_v1 = vld [vmem:[%s1255_s16] sm:$0xff]  ;;  %v532_v2 = vld [vmem:[%s1255_s16 + $0x8] sm:$0xff]  ;;  %s534_s19 = sadd.s32 1, %s1259_s17  ;;  %s524_s18 = sadd.s32 1, %s1263_s18   ;;  %s1263_s18 = sphi %s1261_s18, %s524_s18   ;;  %s1259_s17 = sphi %s1257_s17, %s1258_s17   ;;  %s1255_s16 = sphi %s1253_s16, %s539_s16   ;;  %s1251_s15 = sphi %s1249_s15, %s540_s15  }
 0x140   : >> { %531 = vst [vmem:[%s1251_s15] sm:$0xff] %v530_v1  ;;  %p535_p0 = scmp.ge.s32.totalorder %s534_s19, %s1452_s14  ;;  %p523_p1 = scmp.ge.s32.totalorder %s524_s18, %s1452_s14 }
 0x141   : >> { %533 = vst [vmem:[%s1251_s15 + $0x8] sm:$0xff] %v532_v2 }
 0x142   : >> { %s1524_s19 = smov (%p535_p0, %s534_s19), 0  ;;  %526 = sbr.rel (!%p523_p1) target bundleno = 319 (0x13f), region = 203 }
 0x143   : >> { %s900_s22 = sshll.u32 %s1524_s19, 4  ;;  %s1258_s17 = smov %s1524_s19  }
 0x144   : >> { %s539_s16 = scalar_lea.vmem %s1425_s7, %s900_s22 [#allocation5]   ;;  %s540_s15 = scalar_lea.vmem %s1446_s12, %s900_s22  }
 0x147 PF: > { %s1462_s24 = sand.u32 1, %s1522_s20   ;;  %s925_s25 = sshll.u32 %s1452_s14, 4 }
 0x148   : > { %s545_s28 = scalar_lea.vmem %s1425_s7, %s925_s25 [#allocation5]   ;;  %s547_s30 = scalar_lea.vmem %s1446_s12, %s925_s25  }
 0x149   : > { %p905_p2 = scmp.le.s32.totalorder %s1462_s24, 0 }
 0x14a   : > { %s1265_s0 = smov (!%p905_p2), %s547_s30   ;;  %s1269_s6 = smov (!%p905_p2), %s545_s28  }
 0x14b   : > { %797 = sbr.rel (%p905_p2) target bundleno = 344 (0x158), region = 208  ;;  %s1273_s9 = smov (!%p905_p2), 0  }
 0x14c   : > { %s1277_s11 = smov (!%p905_p2), 0  }
 0x150 LB: >> { %v557_v3 = vld [vmem:[%s1271_s6] sm:$0xff]  ;;  %s559_s20 = sadd.s32 1, %s1275_s9  ;;  %s551_s11 = sadd.s32 1, %s1279_s11   ;;  %s1279_s11 = sphi %s1277_s11, %s551_s11   ;;  %s1275_s9 = sphi %s1273_s9, %s1274_s9   ;;  %s1271_s6 = sphi %s1269_s6, %s564_s6   ;;  %s1267_s0 = sphi %s1265_s0, %s565_s0  }
 0x151   : >> { %558 = vst [vmem:[%s1267_s0] sm:$0xff] %v557_v3  ;;  %p560_p3 = scmp.ge.s32.totalorder %s559_s20, %s1462_s24  ;;  %p550_p5 = scmp.ge.s32.totalorder %s551_s11, %s1462_s24 }
 0x153   : >> { %s1526_s20 = smov (%p560_p3, %s559_s20), 0  ;;  %553 = sbr.rel (!%p550_p5) target bundleno = 336 (0x150), region = 214 }
 0x154   : >> { %s906_s7 = sshll.u32 %s1526_s20, 3  ;;  %s1274_s9 = smov %s1526_s20  }
 0x155   : >> { %s564_s6 = scalar_lea.vmem %s545_s28, %s906_s7 [#allocation5]   ;;  %s565_s0 = scalar_lea.vmem %s547_s30, %s906_s7  }
 0x158 PF: > { %571 = sbr.rel (!%p1374_p4) target bundleno = 388 (0x184), region = 96  ;;  %s573_s12 = ssub.s32 (%p1374_p4), 3, %s1389_s10 }
 0x159   : > { %s1477_s15 = scalar_lea.vmem (%p1374_p4), %s1516_s5, %s1421_s29   ;;  %p574_p6 = scmp.lt.s32.totalorder (%p1374_p4), %s573_s12, 2 }
 0x15d   : > { %s1528_s12 = smov (!%p574_p6, %s573_s12), 2 }
 0x15e   : > { %s909_s16 = sshll.u32 %s1528_s12, 3 }
 0x15f   : > { %p912_p7 = scmp.eq.s32.totalorder %s909_s16, 0 }
 0x160   : > { %s1483_s17 = sshrl.u32 (!%p912_p7), %s1528_s12, 1 }
 0x161   : > { %582 = sbr.rel (%p912_p7) target bundleno = 388 (0x184), region = 100  ;;  %p913_p4 = scmp.le.s32.totalorder (!%p912_p7), %s1483_s17, 0 }
 0x166   : > { %811 = sbr.rel (%p913_p4) target bundleno = 371 (0x173), region = 219  ;;  %s1281_s27 = smov (!%p913_p4), %s1477_s15  }
 0x167   : > { %s1285_s10 = smov (!%p913_p4), %s1430_s8   ;;  %s1289_s18 = smov (!%p913_p4), 0  }
 0x168   : > { %s1293_s29 = smov (!%p913_p4), 0  }
 0x16b LB: >> { %v647_v4 = vld [vmem:[%s1287_s10] sm:$0xff]  ;;  %v649_v5 = vld [vmem:[%s1287_s10 + $0x8] sm:$0xff]  ;;  %s651_s19 = sadd.s32 1, %s1291_s18  ;;  %s641_s29 = sadd.s32 1, %s1295_s29   ;;  %s1295_s29 = sphi %s1293_s29, %s641_s29   ;;  %s1291_s18 = sphi %s1289_s18, %s1290_s18   ;;  %s1287_s10 = sphi %s1285_s10, %s656_s10   ;;  %s1283_s27 = sphi %s1281_s27, %s657_s27  }
 0x16c   : >> { %648 = vst [vmem:[%s1283_s27] sm:$0xff] %v647_v4  ;;  %p652_p8 = scmp.ge.s32.totalorder %s651_s19, %s1483_s17  ;;  %p640_p9 = scmp.ge.s32.totalorder %s641_s29, %s1483_s17 }
 0x16d   : >> { %650 = vst [vmem:[%s1283_s27 + $0x8] sm:$0xff] %v649_v5 }
 0x16e   : >> { %s1530_s19 = smov (%p652_p8, %s651_s19), 0  ;;  %643 = sbr.rel (!%p640_p9) target bundleno = 363 (0x16b), region = 225 }
 0x16f   : >> { %s914_s22 = sshll.u32 %s1530_s19, 4  ;;  %s1290_s18 = smov %s1530_s19  }
 0x170   : >> { %s656_s10 = scalar_lea.vmem %s1430_s8, %s914_s22 [#allocation6]   ;;  %s657_s27 = scalar_lea.vmem %s1477_s15, %s914_s22  }
 0x173 PF: > { %s1493_s24 = sand.u32 1, %s1528_s12   ;;  %s928_s25 = sshll.u32 %s1483_s17, 4 }
 0x174   : > { %s662_s28 = scalar_lea.vmem %s1430_s8, %s928_s25 [#allocation6]   ;;  %s664_s30 = scalar_lea.vmem %s1477_s15, %s928_s25  }
 0x175   : > { %p919_p10 = scmp.le.s32.totalorder %s1493_s24, 0 }
 0x176   : > { %s1297_s0 = smov (!%p919_p10), %s664_s30   ;;  %s1301_s6 = smov (!%p919_p10), %s662_s28  }
 0x177   : > { %825 = sbr.rel (%p919_p10) target bundleno = 388 (0x184), region = 230  ;;  %s1305_s9 = smov (!%p919_p10), 0  }
 0x178   : > { %s1309_s11 = smov (!%p919_p10), 0  }
 0x17c LB: >> { %v674_v6 = vld [vmem:[%s1303_s6] sm:$0xff]  ;;  %s676_s20 = sadd.s32 1, %s1307_s9  ;;  %s668_s11 = sadd.s32 1, %s1311_s11   ;;  %s1311_s11 = sphi %s1309_s11, %s668_s11   ;;  %s1307_s9 = sphi %s1305_s9, %s1306_s9   ;;  %s1303_s6 = sphi %s1301_s6, %s681_s6   ;;  %s1299_s0 = sphi %s1297_s0, %s682_s0  }
 0x17d   : >> { %675 = vst [vmem:[%s1299_s0] sm:$0xff] %v674_v6  ;;  %p677_p11 = scmp.ge.s32.totalorder %s676_s20, %s1493_s24  ;;  %p667_p12 = scmp.ge.s32.totalorder %s668_s11, %s1493_s24 }
 0x17f   : >> { %s1532_s20 = smov (%p677_p11, %s676_s20), 0  ;;  %670 = sbr.rel (!%p667_p12) target bundleno = 380 (0x17c), region = 236 }
 0x180   : >> { %s920_s8 = sshll.u32 %s1532_s20, 3  ;;  %s1306_s9 = smov %s1532_s20  }
 0x181   : >> { %s681_s6 = scalar_lea.vmem %s662_s28, %s920_s8 [#allocation6]   ;;  %s682_s0 = scalar_lea.vmem %s664_s30, %s920_s8  }
 0x184 PF: > { %p15_p13 = scmp.ge.s32.totalorder %s1364_s23, 4   ;;  %s1518_s20 = smov %s1243_s21 }
 0x185   : > { %s1519_s21 = smov %s1372_s26  ;;  %s1520_s22 = smov %s1364_s23 }
 0x186   :  { %17 = sbr.rel (!%p15_p13) target bundleno = 4 (0x4), region = 247 }
 0x18b   :  { %705 = vsyncpa [#allocation4], 1 }
 0x18c   :  { %707 = vsyncpa [#allocation4 + $0x1], 1 }

// kernel: dft_series_decomp.2
= control target key start
LH: loop header
LB: loop body
LE: loop exit
PB: predicated region body
PF: predicated region fallthrough
CT: control target
= control target key end

     0   :  { %s421_s9 = smov 0   ;;  %s482_s0 = inlined_call_operand.vmem [shape: f32[24,16], index: 0, kind: input, shape index: {}]   ;;  %s483_s1 = inlined_call_operand.vmem [shape: f32[16,256], index: 1, kind: input, shape index: {}]   ;;  %s484_s2 = inlined_call_operand.vmem [shape: f32[2,1,128], index: 2, kind: output, shape index: {}]  }
   0x1 LB: > { %s427_s10 = sadd.s32 4294967295, %s404_s9   ;;  %p374_p0 = scmp.ge.s32.totalorder %s404_s9, 1  ;;  %s404_s9 = sphi %s421_s9, %s12_s9  }
   0x2   : > { %p121_p1 = scmp.lt.s32.totalorder %s404_s9, 3 }
   0x4   : > { %p122_p2 = pnand %p374_p0, %p121_p1 }
   0x5   : > { %s375_s17 = sshll.u32 (!%p122_p2), %s427_s10, 1  ;;  %s381_s24 = sshll.u32 (!%p122_p2), %s427_s10, 4 }
   0x6   : > { %125 = sbr.rel (%p122_p2) target bundleno = 1282 (0x502), region = 28  ;;  %p150_p3 = scmp.lt.s32.totalorder (!%p122_p2), %s375_s17, 2 }
   0x7   : > { %p159_p4 = scmp.lt.s32.totalorder (!%p122_p2), %s427_s10, 1 }
   0xb   : > { %v166_v0 = vld [vmem:[%s483_s1 + $0x10] sm:$0xff]  ;;  %v167_v1 = vld [vmem:[%s483_s1 + $0x18] sm:$0xff]  ;;  %v164_v2 = vld [vmem:[%s483_s1] sm:$0xff]  ;;  %s486_s17 = smov (!%p150_p3, %s375_s17), 2  ;;  %vm168_vm0 = vcmask 130048   ;;  %v228_v6 = vlaneseq  ;;  %v231_v8 = vstv %s381_s24  ;;  %s488_s10 = smov (!%p159_p4, %s427_s10), 1 }
   0xc   : > { %189 = vmatpush.msra.mxu0 %v166_v0  ;;  %212 = vmatpush.msra.mxu1 %v167_v1  ;;  %v165_v3 = vld [vmem:[%s483_s1 + $0x8] sm:$0xff]  ;;  %s376_s20 = sshll.u32 %s486_s17, 3  ;;  %s161_s27 = scalar_lea.vmem %s484_s2, %s488_s10 }
   0xd   : > { %384 = vmatpush.msra.mxu2 %v166_v0  ;;  %386 = vmatpush.msra.mxu3 %v167_v1  ;;  %s153_s23 = scalar_lea.vmem %s482_s0, %s376_s20  ;;  %v229_v7 = vshrl.u32 %v228_v6, 7  ;;  %v239_v24 = vand.u32 127, %v228_v6 }
   0xe   : > { %190 = vmatpush.msra.mxu0 %v164_v2  ;;  %213 = vmatpush.msra.mxu1 %v165_v3  ;;  %v162_v4 = vld [vmem:[%s153_s23] sm:$0xff]  ;;  %v163_v5 = vld [vmem:[%s153_s23 + $0x8] sm:$0xff] }
   0xf   : > { %385 = vmatpush.msra.mxu2 %v164_v2  ;;  %387 = vmatpush.msra.mxu3 %v165_v3  ;;  %v448_v9 = vadd.s32 %v231_v8, %v229_v7  ;;  %v230_v14 = vadd.s32 8, %v229_v7  ;;  %v454_v25 = vcvt.s32.f32 %v239_v24 }
  0x10   : > { %377 = vmatmul.msk.f32.vlgmr.msra.gmra.mxu0 %vm168_vm0, %v162_v4  ;;  %379 = vmatmul.msk.f32.vlgmr.msra.gmra.mxu1 %vm168_vm0, %v162_v4 }
  0x11   : > { %378 = vmatmul.msk.f32.vlgmr.msra.gmra.mxu2 %vm168_vm0, %v163_v5  ;;  %380 = vmatmul.msk.f32.vlgmr.msra.gmra.mxu3 %vm168_vm0, %v163_v5  ;;  %vm234_vm1 = vcmp.lt.s32.totalorder %v448_v9, 12  ;;  %v451_v17 = vadd.s32 %v231_v8, %v230_v14 }
  0x13   : > { %vm235_vm2 = vcmp.lt.s32.totalorder %v451_v17, 12 }
  0x8d   : > { %v192_v10 = vpop.f32.mrf.mxu0  ;;  %v215_v11 = vpop.f32.mrf.mxu1 }
  0x8e   : > { %v221_v12 = vmul.f32 %v192_v10, %v192_v10  ;;  %v223_v13 = vmul.f32 %v215_v11, %v215_v11 }
  0x90   : > { %v225_v15 = vadd.f32 %v223_v13, %v221_v12 }
  0x92   : > { %v236_v16 = vsel %vm234_vm1, 0.0, %v225_v15 }
  0x93   : > { %241 = vmax.xlane.f32.xlu0 %v236_v16 }
  0x94   : > { %v195_v18 = vpop.f32.mrf.mxu2  ;;  %v218_v19 = vpop.f32.mrf.mxu3 }
  0x95   : > { %v222_v20 = vmul.f32 %v195_v18, %v195_v18  ;;  %v224_v21 = vmul.f32 %v218_v19, %v218_v19 }
  0x97   : > { %v226_v22 = vadd.f32 %v224_v21, %v222_v20 }
  0x99   : > { %v237_v23 = vsel %vm235_vm2, 0.0, %v226_v22 }
  0x9b   : > { %243 = vmax.xlane.f32.xlu0 %v237_v23 }
 0x106   : > { %v242_v26 = vpop.xlane.xlu0 %241 }
 0x107   : > { %vm245_vm3 = vcmp.eq.f32.partialorder %v236_v16, %v242_v26 }
 0x108   : > { %v247_v27 = vsel %vm245_vm3, %v454_v25, 128.0  ;;  %vm309_vm3 = vcmp.lt.s32.totalorder %v448_v9, 24 }
 0x109   : > { %249 = vmin.xlane.f32.xlu1 %v247_v27 }
 0x10e   : > { %v244_v28 = vpop.xlane.xlu0 %243 }
 0x10f   : > { %vm246_vm4 = vcmp.eq.f32.partialorder %v237_v23, %v244_v28 }
 0x110   : > { %v248_v29 = vsel %vm246_vm4, %v454_v25, 128.0  ;;  %vm310_vm4 = vcmp.lt.s32.totalorder %v451_v17, 24 }
 0x111   : > { %251 = vmin.xlane.f32.xlu1 %v248_v29 }
 0x17c   : > { %v250_v30 = vpop.xlane.xlu1 %249 }
 0x17d   : > { %vm253_vm5 = vcmp.eq.f32.partialorder %v454_v25, %v250_v30 }
 0x17e   : > { %v255_v31 = vsel %vm253_vm5, -1e+30, %v236_v16 }
 0x17f   : > { %257 = vmax.xlane.f32.xlu2 %v255_v31 }
 0x184   : > { %v252_v32 = vpop.xlane.xlu1 %251 }
 0x185   : > { %vm254_vm6 = vcmp.eq.f32.partialorder %v454_v25, %v252_v32 }
 0x186   : > { %v256_v33 = vsel %vm254_vm6, -1e+30, %v237_v23 }
 0x187   : > { %259 = vmax.xlane.f32.xlu2 %v256_v33 }
 0x1f2   : > { %v258_v34 = vpop.xlane.xlu2 %257 }
 0x1f3   : > { %vm261_vm7 = vcmp.eq.f32.partialorder %v255_v31, %v258_v34 }
 0x1f4   : > { %v263_v35 = vsel %vm261_vm7, %v454_v25, 128.0 }
 0x1f5   : > { %265 = vmin.xlane.f32.xlu0 %v263_v35 }
 0x1fa   : > { %v260_v36 = vpop.xlane.xlu2 %259 }
 0x1fb   : > { %vm262_vm8 = vcmp.eq.f32.partialorder %v256_v33, %v260_v36 }
 0x1fc   : > { %v264_v37 = vsel %vm262_vm8, %v454_v25, 128.0 }
 0x1fd   : > { %267 = vmin.xlane.f32.xlu1 %v264_v37 }
 0x268   : > { %v266_v38 = vpop.xlane.xlu0 %265 }
 0x269   : > { %vm269_vm9 = vcmp.eq.f32.partialorder %v454_v25, %v266_v38 }
 0x26a   : > { %v271_v39 = vsel %vm269_vm9, -1e+30, %v255_v31 }
 0x26b   : > { %273 = vmax.xlane.f32.xlu2 %v271_v39 }
 0x270   : > { %v268_v40 = vpop.xlane.xlu1 %267 }
 0x271   : > { %vm270_vm10 = vcmp.eq.f32.partialorder %v454_v25, %v268_v40 }
 0x272   : > { %v272_v41 = vsel %vm270_vm10, -1e+30, %v256_v33 }
 0x273   : > { %275 = vmax.xlane.f32.xlu0 %v272_v41 }
 0x2de   : > { %v274_v42 = vpop.xlane.xlu2 %273 }
 0x2df   : > { %vm277_vm11 = vcmp.eq.f32.partialorder %v271_v39, %v274_v42 }
 0x2e0   : > { %v279_v43 = vsel %vm277_vm11, %v454_v25, 128.0 }
 0x2e1   : > { %281 = vmin.xlane.f32.xlu1 %v279_v43 }
 0x2e6   : > { %v276_v44 = vpop.xlane.xlu0 %275 }
 0x2e7   : > { %vm278_vm12 = vcmp.eq.f32.partialorder %v272_v41, %v276_v44 }
 0x2e8   : > { %v280_v45 = vsel %vm278_vm12, %v454_v25, 128.0 }
 0x2e9   : > { %283 = vmin.xlane.f32.xlu2 %v280_v45 }
 0x354   : > { %v282_v46 = vpop.xlane.xlu1 %281 }
 0x355   : > { %vm285_vm13 = vcmp.eq.f32.partialorder %v454_v25, %v282_v46 }
 0x356   : > { %v287_v47 = vsel %vm285_vm13, -1e+30, %v271_v39 }
 0x357   : > { %289 = vmax.xlane.f32.xlu0 %v287_v47 }
 0x35c   : > { %v284_v48 = vpop.xlane.xlu2 %283 }
 0x35d   : > { %vm286_vm14 = vcmp.eq.f32.partialorder %v454_v25, %v284_v48 }
 0x35e   : > { %v288_v49 = vsel %vm286_vm14, -1e+30, %v272_v41 }
 0x35f   : > { %291 = vmax.xlane.f32.xlu1 %v288_v49 }
 0x3ca   : > { %v290_v50 = vpop.xlane.xlu0 %289 }
 0x3cb   : > { %vm293_vm15 = vcmp.eq.f32.partialorder %v287_v47, %v290_v50 }
 0x3cc   : > { %v295_v51 = vsel %vm293_vm15, %v454_v25, 128.0 }
 0x3cd   : > { %297 = vmin.xlane.f32.xlu2 %v295_v51 }
 0x3d2   : > { %v292_v52 = vpop.xlane.xlu1 %291 }
 0x3d3   : > { %vm294_vm0 = vcmp.eq.f32.partialorder %v288_v49, %v292_v52 }
 0x3d4   : > { %v296_v53 = vsel %vm294_vm0, %v454_v25, 128.0 }
 0x3d5   : > { %299 = vmin.xlane.f32.xlu0 %v296_v53 }
 0x440   : > { %v298_v54 = vpop.xlane.xlu2 %297 }
 0x441   : > { %vm301_vm1 = vcmp.eq.f32.partialorder %v454_v25, %v298_v54 }
 0x442   : > { %v303_v55 = vsel %vm301_vm1, -1e+30, %v287_v47 }
 0x443   : > { %305 = vmax.xlane.f32.xlu1 %v303_v55 }
 0x448   : > { %v300_v56 = vpop.xlane.xlu0 %299 }
 0x449   : > { %vm302_vm2 = vcmp.eq.f32.partialorder %v454_v25, %v300_v56 }
 0x44a   : > { %v304_v57 = vsel %vm302_vm2, -1e+30, %v288_v49 }
 0x44b   : > { %307 = vmax.xlane.f32.xlu2 %v304_v57 }
 0x4b6   : > { %v306_v58 = vpop.xlane.xlu1 %305 }
 0x4b7   : > { %v311_v60 = vsel %vm309_vm3, %v306_v58, inf }
 0x4be   : > { %v308_v59 = vpop.xlane.xlu2 %307 }
 0x4bf   : > { %v312_v61 = vsel %vm310_vm4, %v308_v59, inf }
 0x4c0   : > { %v313_v62 = vmin.f32 %v311_v60, %v312_v61 }
 0x4c2   : > { %v314_v63 = vrot.slane %v313_v62, 4 }
 0x4c4   : > { %v315_v0 = vmin.f32 %v313_v62, %v314_v63 }
 0x4c6   : > { %v316_v1 = vrot.slane %v315_v0, 2 }
 0x4c8   : > { %v317_v2 = vmin.f32 %v315_v0, %v316_v1 }
 0x4ca   : > { %v318_v3 = vrot.slane %v317_v2, 1 }
 0x4cc   : > { %v319_v4 = vmin.f32 %v317_v2, %v318_v3 }
 0x4ce   : > { %388 = vpush %v319_v4 }
 0x4ff   : > { %s389_s28 = spop %388 }
 0x500   : > { %v321_v5 = vstv %s389_s28 }
 0x501   : > { %322 = vst [vmem:[%s161_s27] sm:$0x1] %v321_v5 }
 0x502 PF: > { %s12_s9 = sadd.s32 1, %s404_s9  }
 0x503   : > { %p9_p5 = scmp.ge.s32.totalorder %s12_s9, 4  }
 0x505   :  { %11 = sbr.rel (!%p9_p5) target bundleno = 1 (0x1), region = 58 }

</bundles_post_ra>
